<compile_context>
chip_gen: v7x
topology: tpu7x:2x2x1
jax: 0.10.0
libtpu: 0.0.40
codegen_flags: <defaults>
</compile_context>

<pallas_src>
import functools

import jax
import jax.numpy as jnp
from jax.experimental import pallas as pl
from jax.experimental.pallas import tpu as pltpu


def _vmem_budget_bytes():
    """Generation-aware scoped-VMEM budget (bytes)."""
    cap = 64 * 1024 * 1024  # conservative default (v7x per-TC capacity)
    try:
        info = pltpu.get_tpu_info()
        cap = int(getattr(info, "vmem_capacity_bytes", cap))
    except Exception:
        pass
    # 75% of physical: ~48 MiB on v7x (64 MiB), ~96 MiB on v5e/v6e (128 MiB).
    return max(32 * 1024 * 1024, min(int(cap * 3 // 4), 100 * 1024 * 1024))


def _choose_tk(M, K, itemsize, vmem_budget):
    """Largest 128-aligned K tile fitting 2 input buffers + (M,M) accumulator."""
    k_aligned = -(-K // 128) * 128
    # 2 double-buffered (M, tk) input tiles + 2x (M, M) f32 output buffers,
    # minus a little slack for compiler-internal scratch.
    avail = vmem_budget - 2 * M * M * 4 - (4 << 20)
    tk = max(128, (avail // (2 * M * itemsize)) // 128 * 128)
    if tk >= k_aligned:
        # Whole K fits in one tile.  For large K keep ~4 steps so the input
        # DMA pipelines against the MXU instead of running fully serial.
        if k_aligned > 8192:
            tk = -(-(k_aligned // 4) // 128) * 128
        else:
            tk = k_aligned
    return int(tk)


def _gram_partial_kernel(x_ref, g_ref, *, K, tk, nk_per_split, mask_ragged):
    """Accumulate an (unscaled) partial F @ F^T into the resident (M, M) block.

    Grid = (split, k_tile); k (trailing axis) is the reduction, split is
    "parallel" (engages both TensorCores on v7x via split-K).
    """
    c = pl.program_id(0)   # split index
    k = pl.program_id(1)   # K-tile index within this split

    @pl.when(k == 0)
    def _():
        g_ref[...] = jnp.zeros_like(g_ref)

    x = x_ref[...]  # (M, tk), native dtype — no upcast, no transpose
    if mask_ragged:
        # Zero out-of-range columns of the ragged last tile (and any phantom
        # tile whose block index was clamped).  Pallas boundary reads are
        # unspecified, so this zeroing is mandatory for correctness.
        kg = c * nk_per_split + k
        col0 = kg * tk
        col_ids = jax.lax.broadcasted_iota(jnp.int32, x.shape, dimension=1)
        x = jnp.where(col_ids < (K - col0), x, jnp.zeros_like(x))

    # Contract the lane dim of both operands -> MXU matmul with transposed RHS,
    # no explicit XLU transpose of the (M, tk) tile.
    g_ref[...] += jax.lax.dot_general(
        x, x,
        dimension_numbers=(((1,), (1,)), ((), ())),
        preferred_element_type=jnp.float32,
    )


def gram_matrix(x_nchw, *, tk=None, feat_dtype=None, force_pallas=False):
    """Pallas-backed gram_matrix: (F @ F^T) / (a*b*c*d), F = x.reshape(a*b, c*d)."""
    a, b, c, d = x_nchw.shape
    M = a * b
    K = c * d
    scale = 1.0 / float(a * b * c * d)

    feats = x_nchw.reshape(M, K)
    if feat_dtype is not None:
        # Optional bandwidth saver (precision trade-off); MXU still accumulates f32.
        feats = feats.astype(feat_dtype)
    itemsize = jnp.dtype(feats.dtype).itemsize

    # Tiny-problem fallback: kernel/grid machinery dwarfs the math.
    if not force_pallas and M * K * itemsize < (1 << 20):
        f = feats.astype(jnp.float32)
        return (f @ f.T) * scale

    vmem_budget = _vmem_budget_bytes()
    if tk is None:
        tk = _choose_tk(M, K, itemsize, vmem_budget)
    else:
        tk = max(128, (int(tk) // 128) * 128)

    num_k = -(-K // tk)                       # total K tiles
    num_splits = 2 if num_k >= 2 else 1       # split-K for v7x's 2 TCs
    nk_per_split = -(-num_k // num_splits)
    # Mask needed if the tiled/split coverage exceeds K (ragged or phantom tiles).
    mask_ragged = (num_splits * nk_per_split * tk) != K

    def feat_index_map(ci, ki):
        kg = ci * nk_per_split + ki
        kg = jnp.minimum(kg, num_k - 1)       # clamp phantom tiles of the last split
        return (0, kg)

    kernel = functools.partial(
        _gram_partial_kernel,
        K=K, tk=tk, nk_per_split=nk_per_split, mask_ragged=mask_ragged)

    cost = pl.CostEstimate(
        flops=2 * M * M * K,
        transcendentals=0,
        bytes_accessed=int(M * K * itemsize + num_splits * M * M * 4),
    )

    partials = pl.pallas_call(
        kernel,
        out_shape=jax.ShapeDtypeStruct((num_splits, M, M), jnp.float32),
        grid_spec=pltpu.PrefetchScalarGridSpec(
            num_scalar_prefetch=0,
            grid=(num_splits, nk_per_split),
            in_specs=[pl.BlockSpec((M, tk), feat_index_map)],
            # Resident accumulator: block index constant across the trailing
            # (reduction) axis, one (M, M) block per split.
            out_specs=pl.BlockSpec((None, M, M), lambda ci, ki: (ci, 0, 0)),
        ),
        compiler_params=pltpu.CompilerParams(
            dimension_semantics=("parallel", "arbitrary"),
            vmem_limit_bytes=int(vmem_budget),
        ),
        cost_estimate=cost,
    )(feats)

    # Cross-split sum + scale: tiny (M, M) elementwise work, kept in XLA.
    return jnp.sum(partials, axis=0) * scale


class StyleLoss:
    """JAX/Pallas port of the PyTorch StyleLoss module."""

    def __init__(self, target_feature, *, force_pallas=False, feat_dtype=None):
        self._force = force_pallas
        self._feat_dtype = feat_dtype
        # Target Gram computed once (detached / constant).
        self.target = jax.lax.stop_gradient(
            gram_matrix(target_feature, force_pallas=force_pallas,
                        feat_dtype=feat_dtype))
        self.loss = None

    def __call__(self, x):
        g = gram_matrix(x, force_pallas=self._force, feat_dtype=self._feat_dtype)
        # MSE over the (M, M) Gram is trivial compute; done in plain XLA.
        self.loss = jnp.mean(jnp.square(g - self.target))
        return x  # pass-through, exactly like the PyTorch module


if __name__ == "__main__":
    key = jax.random.PRNGKey(0)
    k_tgt, k_in, k_in2 = jax.random.split(key, 3)

    def ref_gram(t):
        aa, bb, cc, dd = t.shape
        f = t.reshape(aa * bb, cc * dd).astype(jnp.float32)
        return (f @ f.T) / (aa * bb * cc * dd)

    # --- Small demo shape (forces the Pallas kernel even though it's tiny). ---
    a, b, c, d = 2, 4, 16, 16
    target_feature = jax.random.normal(k_tgt, (a, b, c, d), dtype=jnp.float32)
    x = jax.random.normal(k_in, (a, b, c, d), dtype=jnp.float32)

    style = StyleLoss(target_feature, force_pallas=True)
    out = jax.block_until_ready(style(x))
    loss = jax.block_until_ready(style.loss)

    ref_loss = jnp.mean((ref_gram(x) - ref_gram(target_feature)) ** 2)
    assert jnp.allclose(out, x), "StyleLoss.forward must pass input through unchanged"
    assert jnp.allclose(loss, ref_loss, rtol=1e-4, atol=1e-6), (loss, ref_loss)

    # --- Second check: multi-K-tile path with ragged last tile + split-K +
    #     phantom-tile clamp (K=3136, tk=512 -> 7 tiles split 2x4). ---
    x2 = jax.random.normal(k_in2, (1, 16, 56, 56), dtype=jnp.float32)
    g2 = jax.block_until_ready(gram_matrix(x2, tk=512, force_pallas=True))
    g2_ref = ref_gram(x2)
    assert jnp.allclose(g2, g2_ref, rtol=1e-3, atol=1e-5), float(
        jnp.max(jnp.abs(g2 - g2_ref)))

    print("KERNEL_OK")
</pallas_src>

<mosaic_0001>
module attributes {stable_mosaic.version = 11 : i64} {
  func.func @_gram_partial_kernel(%arg0: i32, %arg1: i32, %arg2: memref<8x256xf32, #tpu.memory_space<vmem>>, %arg3: memref<1x8x8xf32, #tpu.memory_space<vmem>>) attributes {dimension_semantics = [#tpu.dimension_semantics<parallel>, #tpu.dimension_semantics<arbitrary>], iteration_bounds = array<i64: 1, 1>, scalar_prefetch = 0 : i64, scratch_operands = 0 : i64, tpu.core_type = #tpu.core_type<tc>, window_params = [{transform_indices = @transform_0, window_bounds = array<i64: 8, 256>}, {transform_indices = @transform_1, window_bounds = array<i64: 1, 8, 8>}]} {
    %c0_i32 = arith.constant 0 : i32
    %0 = arith.cmpi eq, %arg1, %c0_i32 : i32
    %1 = arith.extui %0 : i1 to i32
    %c0_i32_0 = arith.constant 0 : i32
    %2 = arith.cmpi ne, %1, %c0_i32_0 : i32
    scf.if %2 {
      %cst_8 = arith.constant 0.000000e+00 : f32
      %11 = vector.broadcast %cst_8 : f32 to vector<8x8xf32>
      %c0_9 = arith.constant 0 : index
      %c0_10 = arith.constant 0 : index
      %c0_11 = arith.constant 0 : index
      %12 = vector.load %arg3[%c0_9, %c0_10, %c0_11] : memref<1x8x8xf32, #tpu.memory_space<vmem>>, vector<1x8x8xf32>
      %13 = vector.shape_cast %12 : vector<1x8x8xf32> to vector<8x8xf32>
      %14 = vector.shape_cast %11 : vector<8x8xf32> to vector<1x8x8xf32>
      tpu.vector_store %arg3[%c0_9, %c0_10, %c0_11], %14 {strides = array<i32>} : memref<1x8x8xf32, #tpu.memory_space<vmem>>, vector<1x8x8xf32>,
    } else {
    }
    %c0 = arith.constant 0 : index
    %c0_1 = arith.constant 0 : index
    %3 = vector.load %arg2[%c0, %c0_1] : memref<8x256xf32, #tpu.memory_space<vmem>>, vector<8x256xf32>
    %c0_2 = arith.constant 0 : index
    %c0_3 = arith.constant 0 : index
    %c0_4 = arith.constant 0 : index
    %4 = vector.load %arg3[%c0_2, %c0_3, %c0_4] : memref<1x8x8xf32, #tpu.memory_space<vmem>>, vector<1x8x8xf32>
    %5 = vector.shape_cast %4 : vector<1x8x8xf32> to vector<8x8xf32>
    %cst = arith.constant dense<0.000000e+00> : vector<8x8xf32>
    %6 = tpu.matmul %3, %3, %cst {dimension_numbers = #tpu.dot_dimension_numbers<[1], [1], [0], [0], [0, 0, 1, 0], [], []>} : vector<8x256xf32>, vector<8x256xf32>, vector<8x8xf32> -> vector<8x8xf32>
    %7 = arith.addf %5, %6 : vector<8x8xf32>
    %c0_5 = arith.constant 0 : index
    %c0_6 = arith.constant 0 : index
    %c0_7 = arith.constant 0 : index
    %8 = vector.load %arg3[%c0_5, %c0_6, %c0_7] : memref<1x8x8xf32, #tpu.memory_space<vmem>>, vector<1x8x8xf32>
    %9 = vector.shape_cast %8 : vector<1x8x8xf32> to vector<8x8xf32>
    %10 = vector.shape_cast %7 : vector<8x8xf32> to vector<1x8x8xf32>
    tpu.vector_store %arg3[%c0_5, %c0_6, %c0_7], %10 {strides = array<i32>} : memref<1x8x8xf32, #tpu.memory_space<vmem>>, vector<1x8x8xf32>,
    return
  }
  func.func @transform_0(%arg0: i32, %arg1: i32) -> (i32, i32) {
    %c1_i32 = arith.constant 1 : i32
    %0 = arith.muli %arg0, %c1_i32 : i32
    %1 = arith.addi %0, %arg1 : i32
    %c0_i32 = arith.constant 0 : i32
    %2 = arith.minsi %1, %c0_i32 : i32
    %c0_i32_0 = arith.constant 0 : i32
    %c0_i32_1 = arith.constant 0 : i32
    return %c0_i32_0, %2 : i32, i32
  }
  func.func @transform_1(%arg0: i32, %arg1: i32) -> (i32, i32, i32) {
    %c0_i32 = arith.constant 0 : i32
    %c0_i32_0 = arith.constant 0 : i32
    %c0_i32_1 = arith.constant 0 : i32
    return %arg0, %c0_i32, %c0_i32_0 : i32, i32, i32
  }
}

</mosaic_0001>

<bundles_post_ra>
// kernel: tpu_custom_call.1
= control target key start
LH: loop header
LB: loop body
LE: loop exit
PB: predicated region body
PF: predicated region fallthrough
CT: control target
= control target key end

     0   :  { %6 = vsyncpa [#allocation3], 0  ;;  %s220_s0 = inlined_call_operand.hbm [shape: f32[8,256], index: 0, kind: input, shape index: {}]   ;;  %s221_s1 = inlined_call_operand.hbm [shape: f32[1,8,8], index: 1, kind: output, shape index: {}]  }
   0x1   :  { %7 = vsyncpa [#allocation4], 0  ;;  %s181_s6 = smov [#allocation2]   ;;  %s133_s10 = scalar_lea.hbm %s220_s0, 256 }
   0x2   :  { %s20_s7 = sshll.u32 %s181_s6, 4  ;;  %p134_p0 = scmp.ne.s32.totalorder %s220_s0, %s133_s10  ;;  %s21_s7 = int_to_ptr.vmem [resolvable:$true] %s20_s7 }
   0x3   :  { %p137_p1 = scmp.lt.u32.totalorder %s133_s10, %s220_s0 }
   0x5   :  { %p139_p2 = pnand %p137_p1, %p134_p0 }
   0x7   :  { %142 = shalt.err (!%p139_p2)
}
   0x8   :  { %s143_s15 = scalar_lea.vmem %s21_s7, 256  ;;  %p148_p4 = scmp.lt.s32.totalorder %s21_s7, %s21_s7 }
   0x9   :  { %p144_p3 = scmp.ne.s32.totalorder %s21_s7, %s143_s15  ;;  %p149_p5 = scmp.lt.s32.totalorder %s143_s15, %s143_s15 }
   0xb   :  { %p150_p6 = por %p149_p5, %p148_p4 }
   0xd   :  { %p151_p7 = pnand %p150_p6, %p144_p3 }
   0xf   :  { %154 = shalt.err (!%p151_p7)
}
  0x10   :  { %23 = dma.hbm_to_vmem [thread:$0]  %s220_s0, 256, %s21_s7, [#allocation3]  }
  0x11   :  { %177 = dma.done.wait [#allocation3], 256  }
  0x12   :  { %178 = vsyncadd [#allocation3], 4294967040  ;;  %vm35_vm0 = vcmask 64512   ;;  %v182_v0 = vmov 0.0   ;;  %v38_v1 = vld [vmem:[#allocation2 + $0x8] sm:$0xff]  ;;  %v37_v2 = vld [vmem:[#allocation2] sm:$0xff] }
  0x13   :  { %36 = vst.msk [vmem:[#allocation5] sm:$0xff] %vm35_vm0, %v182_v0  ;;  %40 = vmatprep.subr.mxu0 %v38_v1  ;;  %104 = vmatprep.mubr.f32.mxu0 %v38_v1  ;;  %s183_s18 = smov [#allocation5]  }
  0x14   :  { %41 = vmatpush1.xpose.msra.mxu0 %v37_v2  ;;  %s119_s19 = sshll.u32 %s183_s18, 4  ;;  %s120_s19 = int_to_ptr.vmem [resolvable:$true] %s119_s19 }
  0x15   :  { %s155_s0 = scalar_lea.vmem %s120_s19, 128  ;;  %p160_p9 = scmp.lt.s32.totalorder %s120_s19, %s120_s19 }
  0x16   :  { %p156_p8 = scmp.ne.s32.totalorder %s120_s19, %s155_s0  ;;  %p161_p10 = scmp.lt.s32.totalorder %s155_s0, %s155_s0 }
  0x17   :  { %105 = vmatmul.mubr.f32.vlgmr.msra.gmra.mrb[0].mxu0 %v37_v2 }
  0x18   :  { %p162_p11 = por %p161_p10, %p160_p9 }
  0x1a   :  { %v39_v3 = vld [vmem:[#allocation5] sm:$0xff]  ;;  %p163_p12 = pnand %p162_p11, %p156_p8 }
  0xea   :  { %v106_v4 = vpop.f32.mrb[0].mxu0 }
  0xeb   :  { %v110_v5 = vadd.f32 %v106_v4, %v39_v3  ;;  %v108_v6 = vpop.f32.mrb[1].mxu0 }
  0xed   :  { %112 = vst.msk [vmem:[#allocation5] sm:$0xff] %vm35_vm0, %v110_v5 }
  0xee   :  { %166 = shalt.err (!%p163_p12)
}
  0xef   :  { %s167_s22 = scalar_lea.hbm %s221_s1, 128 }
  0xf0   :  { %p168_p13 = scmp.ne.s32.totalorder %s221_s1, %s167_s22  ;;  %p171_p0 = scmp.lt.u32.totalorder %s167_s22, %s221_s1 }
  0xf2   :  { %p173_p1 = pnand %p171_p0, %p168_p13 }
  0xf4   :  { %176 = shalt.err (!%p173_p1)
}
  0xf5   :  { %122 = dma.vmem_to_hbm [thread:$0]  %s120_s19, 128, %s221_s1, [#allocation4]  }
  0xf6   :  { %179 = dma.done.wait [#allocation4], 128  }
  0xf7   :  { %180 = vsyncadd [#allocation4], 4294967168 }
  0xf8   :  { %126 = vsyncpa [#allocation3], 1 }
  0xf9   :  { %127 = vsyncpa [#allocation4], 1 }

</bundles_post_ra>
